<compile_context>
chip_gen: v7x
topology: tpu7x:2x2x1
jax: 0.10.0
libtpu: 0.0.40
codegen_flags: <defaults>
</compile_context>

<pallas_src>
import jax
import jax.numpy as jnp
from jax import lax
from jax.experimental import pallas as pl
from jax.experimental.pallas import tpu as pltpu


def _round_up(x: int, m: int) -> int:
    return ((x + m - 1) // m) * m


def _onehot_gather_kernel(ids_ref, tab_ref, o_ref, acc_ref):
    """One grid step: gather G embedding rows via a one-hot MXU matmul.

    ids_ref: (G, 1)        int32   class ids for this output tile
    tab_ref: (CT, D_pad)   float   one class-tile of the padded table
    o_ref:   (G, D_pad)    float   output tile (revisited across class axis)
    acc_ref: (G, D_pad)    f32     VMEM accumulator across class tiles
    """
    c = pl.program_id(1)

    @pl.when(c == 0)
    def _():
        acc_ref[...] = jnp.zeros_like(acc_ref)

    g = acc_ref.shape[0]
    ct = tab_ref.shape[0]

    # one_hot[r, k] = (ids[r] == c * CT + k)
    class_iota = lax.broadcasted_iota(jnp.int32, (g, ct), 1) + c * ct
    one_hot = (ids_ref[...] == class_iota).astype(tab_ref.dtype)  # (G, CT)

    acc_ref[...] += jnp.dot(
        one_hot,
        tab_ref[...],
        preferred_element_type=jnp.float32,
        precision=lax.Precision.HIGHEST,  # exact f32 selection on the MXU
    )

    @pl.when(c == pl.num_programs(1) - 1)
    def _():
        o_ref[...] = acc_ref[...].astype(o_ref.dtype)


def class_embedder_forward(x_ids, emb_table, *, ids_per_step=256, class_tile=256):
    """Eval-mode forward of ClassEmbedder: embedding lookup via Pallas.

    x_ids:     integer class ids, any shape (typically (B, K))
    emb_table: (n_classes, D) embedding weights
    returns:   x_ids.shape + (D,) embeddings, dtype of emb_table
    """
    orig_shape = x_ids.shape
    n_classes, d = emb_table.shape

    # Clamp ids so a bad id can never drive an OOB access.
    flat_ids = jnp.clip(x_ids.reshape(-1).astype(jnp.int32), 0, n_classes - 1)
    n = flat_ids.shape[0]

    # Tile sizes: G rows per step (sublane-aligned), class tile lane-aligned,
    # embed dim padded to a lane multiple so all stores are full vregs.
    g = min(ids_per_step, _round_up(n, 8))           # multiple of 8
    ct = min(class_tile, _round_up(n_classes, 128))  # multiple of 128
    d_pad = _round_up(d, 128)
    n_pad = _round_up(n, g)
    c_pad = _round_up(n_classes, ct)

    ids_2d = jnp.pad(flat_ids, (0, n_pad - n)).reshape(n_pad, 1)
    tab = jnp.pad(emb_table, ((0, c_pad - n_classes), (0, d_pad - d)))

    grid = (n_pad // g, c_pad // ct)  # (id tiles [parallel], class tiles [reduction])

    out = pl.pallas_call(
        _onehot_gather_kernel,
        out_shape=jax.ShapeDtypeStruct((n_pad, d_pad), emb_table.dtype),
        grid_spec=pltpu.PrefetchScalarGridSpec(
            num_scalar_prefetch=0,
            grid=grid,
            in_specs=[
                # ids: one (G, 1) tile per id-tile grid step.
                pl.BlockSpec((g, 1), lambda i, c: (i, 0)),
                # table: class-tiled; index_map ignores i, so a single class
                # tile stays VMEM-resident across the whole id axis.
                pl.BlockSpec((ct, d_pad), lambda i, c: (c, 0)),
            ],
            out_specs=pl.BlockSpec((g, d_pad), lambda i, c: (i, 0)),
            scratch_shapes=[pltpu.VMEM((g, d_pad), jnp.float32)],
        ),
        compiler_params=pltpu.CompilerParams(
            dimension_semantics=("parallel", "arbitrary"),
        ),
    )(ids_2d, tab)

    out = out[:n, :d]
    return out.reshape(orig_shape + (d,))


# TODO(synk): training-mode cond_drop (bernoulli mask -> null_ids = n_classes)
# is not implemented; as written in the PyTorch reference it would index past
# the (n_classes, D) table, so only the eval forward is reproduced here.


if __name__ == "__main__":
    key = jax.random.PRNGKey(0)
    k_tab, k_ids, k_tab2, k_ids2 = jax.random.split(key, 4)

    # --- Case 1: the module's typical shapes (B, K) ids, D=128 ---------------
    B, K = 2, 1
    N_CLASSES = 16
    EMBED_DIM = 128

    emb_table = jax.random.normal(k_tab, (N_CLASSES, EMBED_DIM), dtype=jnp.float32)
    x_ids = jax.random.randint(k_ids, (B, K), 0, N_CLASSES, dtype=jnp.int32)

    c = class_embedder_forward(x_ids, emb_table)
    c = jax.block_until_ready(c)

    ref = jnp.take(emb_table, x_ids.reshape(-1), axis=0).reshape(B, K, EMBED_DIM)
    assert c.shape == (B, K, EMBED_DIM)
    assert c.dtype == emb_table.dtype
    assert jnp.allclose(c, ref, atol=1e-5, rtol=1e-5), "Pallas gather mismatch (case 1)"

    # --- Case 2: unaligned shapes, multiple id tiles and class tiles ---------
    B2, K2 = 3, 5
    N_CLASSES2, EMBED_DIM2 = 200, 96   # exercises class-tile accumulation + padding

    emb_table2 = jax.random.normal(k_tab2, (N_CLASSES2, EMBED_DIM2), dtype=jnp.float32)
    x_ids2 = jax.random.randint(k_ids2, (B2, K2), 0, N_CLASSES2, dtype=jnp.int32)

    c2 = class_embedder_forward(x_ids2, emb_table2, ids_per_step=8, class_tile=128)
    c2 = jax.block_until_ready(c2)

    ref2 = jnp.take(emb_table2, x_ids2.reshape(-1), axis=0).reshape(B2, K2, EMBED_DIM2)
    assert c2.shape == (B2, K2, EMBED_DIM2)
    assert jnp.allclose(c2, ref2, atol=1e-5, rtol=1e-5), "Pallas gather mismatch (case 2)"

    print("KERNEL_OK")
</pallas_src>

<mosaic_0001>
module attributes {stable_mosaic.version = 11 : i64} {
  func.func @_onehot_gather_kernel(%arg0: i32, %arg1: i32, %arg2: memref<8x1xi32, #tpu.memory_space<vmem>>, %arg3: memref<128x128xf32, #tpu.memory_space<vmem>>, %arg4: memref<8x128xf32, #tpu.memory_space<vmem>>, %arg5: memref<8x128xf32, #tpu.memory_space<vmem>>) attributes {dimension_semantics = [#tpu.dimension_semantics<parallel>, #tpu.dimension_semantics<arbitrary>], iteration_bounds = array<i64: 1, 1>, scalar_prefetch = 0 : i64, scratch_operands = 1 : i64, tpu.core_type = #tpu.core_type<tc>, window_params = [{transform_indices = @transform_0, window_bounds = array<i64: 8, 1>}, {transform_indices = @transform_1, window_bounds = array<i64: 128, 128>}, {transform_indices = @transform_2, window_bounds = array<i64: 8, 128>}]} {
    %c0_i32 = arith.constant 0 : i32
    %0 = arith.cmpi eq, %arg1, %c0_i32 : i32
    %1 = arith.extui %0 : i1 to i32
    %c0_i32_0 = arith.constant 0 : i32
    %2 = arith.cmpi ne, %1, %c0_i32_0 : i32
    scf.if %2 {
      %cst_10 = arith.constant 0.000000e+00 : f32
      %20 = vector.broadcast %cst_10 : f32 to vector<8x128xf32>
      %c0_11 = arith.constant 0 : index
      %c0_12 = arith.constant 0 : index
      %21 = vector.load %arg5[%c0_11, %c0_12] : memref<8x128xf32, #tpu.memory_space<vmem>>, vector<8x128xf32>
      tpu.vector_store %arg5[%c0_11, %c0_12], %20 {strides = array<i32>} : memref<8x128xf32, #tpu.memory_space<vmem>>, vector<8x128xf32>,
    } else {
    }
    %3 = tpu.iota {dimensions = array<i32: 1>} : vector<8x128xi32>
    %c128_i32 = arith.constant 128 : i32
    %4 = arith.muli %arg1, %c128_i32 : i32
    %5 = vector.broadcast %4 : i32 to vector<8x128xi32>
    %6 = arith.addi %3, %5 : vector<8x128xi32>
    %c0 = arith.constant 0 : index
    %c0_1 = arith.constant 0 : index
    %7 = vector.load %arg2[%c0, %c0_1] : memref<8x1xi32, #tpu.memory_space<vmem>>, vector<8x1xi32>
    %8 = vector.broadcast %7 : vector<8x1xi32> to vector<8x128xi32>
    %9 = arith.cmpi eq, %8, %6 : vector<8x128xi32>
    %10 = arith.extui %9 : vector<8x128xi1> to vector<8x128xi32>
    %11 = arith.sitofp %10 : vector<8x128xi32> to vector<8x128xf32>
    %c0_2 = arith.constant 0 : index
    %c0_3 = arith.constant 0 : index
    %12 = vector.load %arg5[%c0_2, %c0_3] : memref<8x128xf32, #tpu.memory_space<vmem>>, vector<8x128xf32>
    %c0_4 = arith.constant 0 : index
    %c0_5 = arith.constant 0 : index
    %13 = vector.load %arg3[%c0_4, %c0_5] : memref<128x128xf32, #tpu.memory_space<vmem>>, vector<128x128xf32>
    %cst = arith.constant dense<0.000000e+00> : vector<8x128xf32>
    %14 = tpu.matmul %11, %13, %cst {dimension_numbers = #tpu.dot_dimension_numbers<[1], [0], [0], [1], [0, 0, 1, 1], [], []>, precision = #tpu.contract_precision<fp32>} : vector<8x128xf32>, vector<128x128xf32>, vector<8x128xf32> -> vector<8x128xf32>
    %15 = arith.addf %12, %14 : vector<8x128xf32>
    %c0_6 = arith.constant 0 : index
    %c0_7 = arith.constant 0 : index
    %16 = vector.load %arg5[%c0_6, %c0_7] : memref<8x128xf32, #tpu.memory_space<vmem>>, vector<8x128xf32>
    tpu.vector_store %arg5[%c0_6, %c0_7], %15 {strides = array<i32>} : memref<8x128xf32, #tpu.memory_space<vmem>>, vector<8x128xf32>,
    %c0_i32_8 = arith.constant 0 : i32
    %17 = arith.cmpi eq, %arg1, %c0_i32_8 : i32
    %18 = arith.extui %17 : i1 to i32
    %c0_i32_9 = arith.constant 0 : i32
    %19 = arith.cmpi ne, %18, %c0_i32_9 : i32
    scf.if %19 {
      %c0_10 = arith.constant 0 : index
      %c0_11 = arith.constant 0 : index
      %20 = vector.load %arg5[%c0_10, %c0_11] : memref<8x128xf32, #tpu.memory_space<vmem>>, vector<8x128xf32>
      %c0_12 = arith.constant 0 : index
      %c0_13 = arith.constant 0 : index
      %21 = vector.load %arg4[%c0_12, %c0_13] : memref<8x128xf32, #tpu.memory_space<vmem>>, vector<8x128xf32>
      tpu.vector_store %arg4[%c0_12, %c0_13], %20 {strides = array<i32>} : memref<8x128xf32, #tpu.memory_space<vmem>>, vector<8x128xf32>,
    } else {
    }
    return
  }
  func.func @transform_0(%arg0: i32, %arg1: i32) -> (i32, i32) {
    %c0_i32 = arith.constant 0 : i32
    %c0_i32_0 = arith.constant 0 : i32
    return %arg0, %c0_i32 : i32, i32
  }
  func.func @transform_1(%arg0: i32, %arg1: i32) -> (i32, i32) {
    %c0_i32 = arith.constant 0 : i32
    %c0_i32_0 = arith.constant 0 : i32
    return %arg1, %c0_i32 : i32, i32
  }
  func.func @transform_2(%arg0: i32, %arg1: i32) -> (i32, i32) {
    %c0_i32 = arith.constant 0 : i32
    %c0_i32_0 = arith.constant 0 : i32
    return %arg0, %c0_i32 : i32, i32
  }
}

</mosaic_0001>

<bundles_post_ra>
// kernel: tpu_custom_call.1
= control target key start
LH: loop header
LB: loop body
LE: loop exit
PB: predicated region body
PF: predicated region fallthrough
CT: control target
= control target key end

     0   :  { %7 = vsyncpa [#allocation4], 0  ;;  %s1615_s0 = inlined_call_operand.vmem [shape: s32[8,1], index: 0, kind: input, shape index: {}]   ;;  %s1616_s1 = inlined_call_operand.hbm [shape: f32[128,128], index: 1, kind: input, shape index: {}]   ;;  %s1617_s2 = inlined_call_operand.hbm [shape: f32[8,128], index: 2, kind: output, shape index: {}]  }
   0x1   :  { %8 = vsyncpa [#allocation5], 0  ;;  %s1250_s9 = smov [#allocation3]   ;;  %s1202_s13 = scalar_lea.hbm %s1616_s1, 2048 }
   0x2   :  { %s16_s10 = sshll.u32 %s1250_s9, 4  ;;  %p1203_p0 = scmp.ne.s32.totalorder %s1616_s1, %s1202_s13  ;;  %s17_s10 = int_to_ptr.vmem [resolvable:$true] %s16_s10 }
   0x3   :  { %p1206_p1 = scmp.lt.u32.totalorder %s1202_s13, %s1616_s1 }
   0x5   :  { %p1208_p2 = pnand %p1206_p1, %p1203_p0 }
   0x7   :  { %1211 = shalt.err (!%p1208_p2)
}
   0x8   :  { %s1212_s18 = scalar_lea.vmem %s17_s10, 2048  ;;  %p1217_p4 = scmp.lt.s32.totalorder %s17_s10, %s17_s10 }
   0x9   :  { %p1213_p3 = scmp.ne.s32.totalorder %s17_s10, %s1212_s18  ;;  %p1218_p5 = scmp.lt.s32.totalorder %s1212_s18, %s1212_s18 }
   0xb   :  { %p1219_p6 = por %p1218_p5, %p1217_p4 }
   0xd   :  { %p1220_p7 = pnand %p1219_p6, %p1213_p3 }
   0xf   :  { %1223 = shalt.err (!%p1220_p7)
}
  0x10   :  { %s1251_s19 = smov 128   ;;  %s1252_s20 = smov 8  }
  0x11   :  { %22 = dma.hbm_to_vmem [thread:$0]  %s1616_s1, 2048, %s17_s10, [#allocation4], %s1251_s19, %s1251_s19, %s1252_s20  }
  0x12   :  { %1246 = dma.done.wait [#allocation4], 2048  }
  0x13   :  { %1247 = vsyncadd [#allocation4], 4294965248  ;;  %v1253_v0 = vmov 0   ;;  %v1254_v1 = vmov 0.0|0.0   ;;  %v36_v2 = vld [vmem:[%s1615_s0] sm:$0xff]  ;;  %v45_v4 = vld [vmem:[#allocation3 + $0x8] sm:$0xff] }
  0x14   :  { %1201 = vset.pattern.permute.xlu0 %v1253_v0  ;;  %1111 = vmatprep.subr.bf16.mxu0 %v1254_v1  ;;  %v44_v3 = vld [vmem:[#allocation3] sm:$0xff]  ;;  %v64_v6 = vand.u32 4294901760, %v45_v4  ;;  %v46_v7 = vld [vmem:[#allocation3 + $0x10] sm:$0xff]  ;;  %v47_v8 = vld [vmem:[#allocation3 + $0x18] sm:$0xff]  ;;  %vm1255_vm0 = vmmov 0   ;;  %v1256_v53 = vmov 0.0  }
  0x15   :  { %1039 = vmatprep.subr.bf16.mxu1 %v1254_v1  ;;  %38 = vperm.xlu0 %1201, %v36_v2   ;;  %v61_v5 = vand.u32 4294901760, %v44_v3  ;;  %v48_v9 = vld [vmem:[#allocation3 + $0x20] sm:$0xff]  ;;  %v67_v10 = vand.u32 4294901760, %v46_v7  ;;  %v70_v11 = vand.u32 4294901760, %v47_v8  ;;  %v49_v12 = vld [vmem:[#allocation3 + $0x28] sm:$0xff]  ;;  %v50_v14 = vld [vmem:[#allocation3 + $0x30] sm:$0xff] }
  0x16   :  { %v73_v13 = vand.u32 4294901760, %v48_v9  ;;  %v51_v15 = vld [vmem:[#allocation3 + $0x38] sm:$0xff]  ;;  %v1295_v18 = vsub.f32 %v45_v4, %v64_v6  ;;  %v76_v19 = vand.u32 4294901760, %v49_v12  ;;  %v1297_v20 = vld [vmem:[#allocation3 + $0x40] sm:$0xff]  ;;  %v1299_v21 = vld [vmem:[#allocation3 + $0x48] sm:$0xff]  ;;  %v79_v30 = vand.u32 4294901760, %v50_v14  ;;  %966 = vmatprep.mubr.msk.f32.mxu0 %vm1255_vm0, %v1256_v53  ;;  %861 = vmatprep.mubr.msk.f32.mxu1 %vm1255_vm0, %v1256_v53 }
  0x17   :  { %v1291_v16 = vpack.c.bf16 %v64_v6, %v61_v5  ;;  %v1293_v17 = vsub.f32 %v44_v3, %v61_v5  ;;  %v1301_v22 = vld [vmem:[#allocation3 + $0x50] sm:$0xff]  ;;  %v1303_v23 = vsub.f32 %v46_v7, %v67_v10  ;;  %v1305_v24 = vsub.f32 %v47_v8, %v70_v11  ;;  %v1309_v26 = vld [vmem:[#allocation3 + $0x58] sm:$0xff]  ;;  %v1311_v27 = vld [vmem:[#allocation3 + $0x60] sm:$0xff]  ;;  %s1258_s0 = smov [#allocation6]  }
  0x18   :  { %v1307_v25 = vsub.f32 %v48_v9, %v73_v13  ;;  %v1315_v28 = vpack.c.bf16 %v70_v11, %v67_v10  ;;  %v1317_v29 = vsub.f32 %v49_v12, %v76_v19  ;;  %v82_v31 = vand.u32 4294901760, %v51_v15  ;;  %v1324_v35 = vld [vmem:[#allocation3 + $0x68] sm:$0xff]  ;;  %v1332_v40 = vld [vmem:[#allocation3 + $0x70] sm:$0xff]  ;;  %v1334_v41 = vld [vmem:[#allocation3 + $0x78] sm:$0xff]  ;;  %s714_s1 = sshll.u32 %s1258_s0, 4  ;;  %s715_s1 = int_to_ptr.vmem [resolvable:$true] %s714_s1 }
  0x19   :  { %1113 = vmatpush3.bf16.msra.mxu0 %v1291_v16  ;;  %1041 = vmatpush3.bf16.msra.mxu1 %v1291_v16  ;;  %v85_v32 = vand.u32 4294901760, %v1297_v20  ;;  %v88_v33 = vand.u32 4294901760, %v1299_v21  ;;  %v91_v34 = vand.u32 4294901760, %v1301_v22  ;;  %v1326_v36 = vsub.f32 %v50_v14, %v79_v30  ;;  %s1224_s25 = scalar_lea.vmem %s715_s1, 128  ;;  %p1229_p9 = scmp.lt.s32.totalorder %s715_s1, %s715_s1 }
  0x1a   :  { %1114 = vmatprep.subr.bf16.mxu0 %v1254_v1  ;;  %1042 = vmatprep.subr.bf16.mxu1 %v1254_v1  ;;  %v1328_v37 = vsub.f32 %v51_v15, %v82_v31  ;;  %v94_v38 = vand.u32 4294901760, %v1309_v26  ;;  %v97_v39 = vand.u32 4294901760, %v1311_v27  ;;  %v1336_v42 = vpack.c.bf16 %v76_v19, %v73_v13  ;;  %p1225_p8 = scmp.ne.s32.totalorder %s715_s1, %s1224_s25  ;;  %p1230_p10 = scmp.lt.s32.totalorder %s1224_s25, %s1224_s25 }
  0x1b   :  { %v1339_v43 = vsub.f32 %v1297_v20, %v85_v32  ;;  %v1342_v44 = vsub.f32 %v1299_v21, %v88_v33  ;;  %v1349_v45 = vsub.f32 %v1301_v22, %v91_v34  ;;  %v100_v47 = vand.u32 4294901760, %v1324_v35 }
  0x1c   :  { %v1354_v46 = vsub.f32 %v1309_v26, %v94_v38  ;;  %v1360_v48 = vsub.f32 %v1311_v27, %v97_v39  ;;  %v103_v49 = vand.u32 4294901760, %v1332_v40  ;;  %v106_v50 = vand.u32 4294901760, %v1334_v41  ;;  %p1231_p11 = por %p1230_p10, %p1229_p9 }
  0x1d   :  { %1116 = vmatpush3.bf16.msra.mxu0 %v1315_v28  ;;  %1044 = vmatpush3.bf16.msra.mxu1 %v1315_v28  ;;  %v154_v51 = vand.u32 4294901760, %v1293_v17  ;;  %v1370_v52 = vsub.f32 %v1324_v35, %v100_v47  ;;  %v161_v54 = vand.u32 4294901760, %v1295_v18  ;;  %v168_v55 = vand.u32 4294901760, %v1303_v23 }
  0x1e   :  { %1117 = vmatprep.subr.bf16.mxu0 %v1254_v1  ;;  %1045 = vmatprep.subr.bf16.mxu1 %v1254_v1  ;;  %v1378_v56 = vpack.c.bf16 %v82_v31, %v79_v30  ;;  %v1383_v57 = vsub.f32 %v1332_v40, %v103_v49  ;;  %v1388_v58 = vsub.f32 %v1334_v41, %v106_v50  ;;  %v175_v62 = vand.u32 4294901760, %v1305_v24  ;;  %p1232_p12 = pnand %p1231_p11, %p1225_p8 }
  0x1f   :  { %v155_v59 = vsub.f32 %v1293_v17, %v154_v51  ;;  %v1393_v60 = vpack.c.bf16 %v161_v54, %v154_v51  ;;  %v162_v61 = vsub.f32 %v1295_v18, %v161_v54  ;;  %v169_v63 = vsub.f32 %v1303_v23, %v168_v55 }
  0x20   :  { %v182_v2 = vand.u32 4294901760, %v1307_v25  ;;  %v189_v3 = vand.u32 4294901760, %v1317_v29  ;;  %v1402_v5 = vpack.c.bf16 %v175_v62, %v168_v55  ;;  %v176_v7 = vsub.f32 %v1305_v24, %v175_v62 }
  0x21   :  { %1119 = vmatpush3.bf16.msra.mxu0 %v1336_v42  ;;  %1047 = vmatpush3.bf16.msra.mxu1 %v1336_v42  ;;  %v156_v0 = vand.u32 4294901760, %v155_v59  ;;  %v163_v4 = vand.u32 4294901760, %v162_v61  ;;  %v170_v6 = vand.u32 4294901760, %v169_v63  ;;  %v196_v11 = vand.u32 4294901760, %v1326_v36 }
  0x22   :  { %1120 = vmatprep.subr.bf16.mxu0 %v1254_v1  ;;  %1048 = vmatprep.subr.bf16.mxu1 %v1254_v1  ;;  %v1405_v8 = vpack.c.bf16 %v189_v3, %v182_v2  ;;  %v183_v9 = vsub.f32 %v1307_v25, %v182_v2  ;;  %v190_v10 = vsub.f32 %v1317_v29, %v189_v3  ;;  %v177_v14 = vand.u32 4294901760, %v176_v7 }
  0x23   :  { %v1412_v12 = vpack.c.bf16 %v88_v33, %v85_v32  ;;  %v1414_v13 = vpack.c.bf16 %v163_v4, %v156_v0  ;;  %v203_v15 = vand.u32 4294901760, %v1328_v37  ;;  %v197_v21 = vsub.f32 %v1326_v36, %v196_v11 }
  0x24   :  { %v184_v19 = vand.u32 4294901760, %v183_v9  ;;  %v191_v20 = vand.u32 4294901760, %v190_v10  ;;  %v1420_v30 = vpack.c.bf16 %v177_v14, %v170_v6  ;;  %v210_v54 = vand.u32 4294901760, %v1339_v43 }
  0x25   :  { %1122 = vmatpush3.bf16.msra.mxu0 %v1378_v56  ;;  %1050 = vmatpush3.bf16.msra.mxu1 %v1378_v56  ;;  %v1422_v31 = vpack.c.bf16 %v203_v15, %v196_v11  ;;  %v204_v32 = vsub.f32 %v1328_v37, %v203_v15  ;;  %v198_v51 = vand.u32 4294901760, %v197_v21  ;;  %v217_v55 = vand.u32 4294901760, %v1342_v44 }
  0x26   :  { %1123 = vmatprep.subr.bf16.mxu0 %v1254_v1  ;;  %1051 = vmatprep.subr.bf16.mxu1 %v1254_v1  ;;  %v1425_v33 = vpack.c.bf16 %v191_v20, %v184_v19  ;;  %v1435_v59 = vpack.c.bf16 %v94_v38, %v91_v34  ;;  %v211_v63 = vsub.f32 %v1339_v43, %v210_v54  ;;  %v224_v22 = vand.u32 4294901760, %v1349_v45 }
  0x27   :  { %v205_v61 = vand.u32 4294901760, %v204_v32  ;;  %v1439_v62 = vpack.c.bf16 %v217_v55, %v210_v54  ;;  %v218_v0 = vsub.f32 %v1342_v44, %v217_v55  ;;  %v231_v26 = vand.u32 4294901760, %v1354_v46 }
  0x28   :  { %v212_v3 = vand.u32 4294901760, %v211_v63  ;;  %v1453_v34 = vpack.c.bf16 %v100_v47, %v97_v39  ;;  %v225_v7 = vsub.f32 %v1349_v45, %v224_v22  ;;  %v238_v11 = vand.u32 4294901760, %v1360_v48 }
  0x29   :  { %1125 = vmatpush3.bf16.msra.mxu0 %v1412_v12  ;;  %1053 = vmatpush3.bf16.msra.mxu1 %v1412_v12  ;;  %v1443_v2 = vpack.c.bf16 %v205_v61, %v198_v51  ;;  %v219_v4 = vand.u32 4294901760, %v218_v0  ;;  %v1459_v6 = vpack.c.bf16 %v231_v26, %v224_v22  ;;  %v232_v9 = vsub.f32 %v1354_v46, %v231_v26 }
  0x2a   :  { %1126 = vmatprep.subr.bf16.mxu0 %v1254_v1  ;;  %1054 = vmatprep.subr.bf16.mxu1 %v1254_v1  ;;  %v226_v10 = vand.u32 4294901760, %v225_v7  ;;  %v245_v27 = vand.u32 4294901760, %v1370_v52  ;;  %v1471_v35 = vpack.c.bf16 %v106_v50, %v103_v49  ;;  %v239_v14 = vsub.f32 %v1360_v48, %v238_v11 }
  0x2b   :  { %v1457_v38 = vpack.c.bf16 %v219_v4, %v212_v3  ;;  %v233_v39 = vand.u32 4294901760, %v232_v9  ;;  %v252_v32 = vand.u32 4294901760, %v1383_v57  ;;  %v259_v40 = vand.u32 4294901760, %v1388_v58 }
  0x2c   :  { %v1154_v47 = vpack.c.bf16 %v245_v27, %v238_v11  ;;  %v246_v15 = vsub.f32 %v1370_v52, %v245_v27  ;;  %v240_v20 = vand.u32 4294901760, %v239_v14  ;;  %v1088_v63 = vpack.c.bf16 %v1295_v18, %v1293_v17 }
  0x2d   :  { %1128 = vmatpush3.bf16.msra.mxu0 %v1435_v59  ;;  %1056 = vmatpush3.bf16.msra.mxu1 %v1435_v59  ;;  %v1079_v19 = vpack.c.bf16 %v233_v39, %v226_v10  ;;  %v1157_v49 = vpack.c.bf16 %v259_v40, %v252_v32  ;;  %v253_v50 = vsub.f32 %v1383_v57, %v252_v32  ;;  %v31_v18 = vlaneseq }
  0x2e   :  { %1129 = vmatprep.subr.bf16.mxu0 %v1254_v1  ;;  %1057 = vmatprep.subr.bf16.mxu1 %v1254_v1  ;;  %v247_v21 = vand.u32 4294901760, %v246_v15  ;;  %v260_v51 = vsub.f32 %v1388_v58, %v259_v40  ;;  %v1091_v0 = vpack.c.bf16 %v1305_v24, %v1303_v23  ;;  %v1094_v3 = vpack.c.bf16 %v1317_v29, %v1307_v25 }
  0x2f   :  { %v254_v54 = vand.u32 4294901760, %v253_v50  ;;  %v1097_v4 = vpack.c.bf16 %v1328_v37, %v1326_v36  ;;  %v1100_v22 = vpack.c.bf16 %v1342_v44, %v1339_v43  ;;  %v1103_v26 = vpack.c.bf16 %v1354_v46, %v1349_v45 }
  0x30   :  { %v1082_v41 = vpack.c.bf16 %v247_v21, %v240_v20  ;;  %v261_v55 = vand.u32 4294901760, %v260_v51  ;;  %v1106_v7 = vpack.c.bf16 %v1370_v52, %v1360_v48  ;;  %v1109_v17 = vpack.c.bf16 %v1388_v58, %v1383_v57 }
  0x31   :  { %1131 = vmatpush3.bf16.msra.mxu0 %v1453_v34  ;;  %1059 = vmatpush3.bf16.msra.mxu1 %v1453_v34  ;;  %v1501_v9 = vand.u32 127, %v31_v18 }
  0x32   :  { %1132 = vmatprep.subr.bf16.mxu0 %v1254_v1  ;;  %1060 = vmatprep.subr.bf16.mxu1 %v1254_v1  ;;  %v1085_v61 = vpack.c.bf16 %v261_v55, %v254_v54 }
  0x35   :  { %1134 = vmatpush3.bf16.msra.mxu0 %v1471_v35  ;;  %1062 = vmatpush3.bf16.msra.mxu1 %v1471_v35 }
  0x36   :  { %1135 = vmatprep.subr.bf16.mxu0 %v1254_v1  ;;  %1063 = vmatprep.subr.bf16.mxu1 %v1254_v1 }
  0x94   :  { %v1503_v10 = vpop.permute.xlu0 %38 }
  0x95   :  { %vm40_vm1 = vcmp.eq.s32.totalorder %v1503_v10, %v1501_v9 }
  0x96   :  { %v723_v11 = vsel %vm40_vm1, 1.0, %v1256_v53 }
  0x97   :  { %v1511_v27 = vsub.f32 %v723_v11, %v723_v11 }
  0x99   :  { %v143_v39 = vand.u32 4294901760, %v1511_v27 }
  0x9b   :  { %967 = vmatmul.mubr.f32.vlgmr.msra.gmra.mrb[0].mxu0 %v143_v39  ;;  %v144_v14 = vsub.f32 %v1511_v27, %v143_v39 }
  0x9c   :  { %1137 = vmatpush3.bf16.msra.mxu0 %v1393_v60  ;;  %1001 = vmatprep.mubr.msk.f32.mxu0 %vm1255_vm0, %v1256_v53  ;;  %v1257_v60 = vmov 1.0  }
  0x9d   :  { %1138 = vmatprep.subr.bf16.mxu0 %v1254_v1  ;;  %v145_v15 = vand.u32 4294901760, %v144_v14 }
  0x9f   :  { %862 = vmatmul.mubr.f32.vlgmr.msra.gmra.mrb[0].mxu1 %v145_v15 }
  0xa0   :  { %1065 = vmatpush3.bf16.msra.mxu1 %v1414_v13  ;;  %1140 = vmatpush3.bf16.msra.mxu0 %v1402_v5 }
  0xa1   :  { %1066 = vmatprep.subr.bf16.mxu1 %v1254_v1  ;;  %1141 = vmatprep.subr.bf16.mxu0 %v1254_v1 }
  0xa2   :  { %896 = vmatprep.mubr.msk.f32.mxu1 %vm1255_vm0, %v1256_v53 }
  0xa4   :  { %1068 = vmatpush3.bf16.msra.mxu1 %v1420_v30  ;;  %1143 = vmatpush3.bf16.msra.mxu0 %v1405_v8 }
  0xa5   :  { %1069 = vmatprep.subr.bf16.mxu1 %v1254_v1  ;;  %1144 = vmatprep.subr.bf16.mxu0 %v1254_v1 }
  0xa8   :  { %1071 = vmatpush3.bf16.msra.mxu1 %v1425_v33  ;;  %1146 = vmatpush3.bf16.msra.mxu0 %v1422_v31 }
  0xa9   :  { %1072 = vmatprep.subr.bf16.mxu1 %v1254_v1  ;;  %1147 = vmatprep.subr.bf16.mxu0 %v1254_v1 }
  0xac   :  { %1074 = vmatpush3.bf16.msra.mxu1 %v1443_v2  ;;  %1149 = vmatpush3.bf16.msra.mxu0 %v1439_v62 }
  0xad   :  { %1075 = vmatprep.subr.bf16.mxu1 %v1254_v1  ;;  %1150 = vmatprep.subr.bf16.mxu0 %v1254_v1 }
  0xb0   :  { %1077 = vmatpush3.bf16.msra.mxu1 %v1457_v38  ;;  %1152 = vmatpush3.bf16.msra.mxu0 %v1459_v6 }
  0xb1   :  { %1078 = vmatprep.subr.bf16.mxu1 %v1254_v1  ;;  %1153 = vmatprep.subr.bf16.mxu0 %v1254_v1 }
  0xb4   :  { %1080 = vmatpush3.bf16.msra.mxu1 %v1079_v19  ;;  %1155 = vmatpush3.bf16.msra.mxu0 %v1154_v47 }
  0xb5   :  { %1081 = vmatprep.subr.bf16.mxu1 %v1254_v1  ;;  %1156 = vmatprep.subr.bf16.mxu0 %v1254_v1 }
  0xb8   :  { %1083 = vmatpush3.bf16.msra.mxu1 %v1082_v41  ;;  %1158 = vmatpush3.bf16.msra.mxu0 %v1157_v49 }
  0xb9   :  { %1084 = vmatprep.subr.bf16.mxu1 %v1254_v1  ;;  %1159 = vmatprep.subr.bf16.mxu0 %v1254_v1 }
  0xbb   :  { %1002 = vmatmul.mubr.msk.f32.vlgmr.msra.gmra.mrb[0].mxu0 %vm40_vm1, %v1257_v60 }
  0xbc   :  { %1086 = vmatpush3.bf16.msra.mxu1 %v1085_v61  ;;  %1161 = vmatpush3.bf16.msra.mxu0 %v1291_v16 }
  0xbd   :  { %1087 = vmatprep.subr.bf16.mxu1 %v1254_v1  ;;  %1162 = vmatprep.subr.bf16.mxu0 %v1254_v1 }
  0xbe   :  { %1036 = vmatprep.mubr.msk.f32.mxu0 %vm1255_vm0, %v1256_v53 }
  0xbf   :  { %897 = vmatmul.mubr.msk.f32.vlgmr.msra.gmra.mrb[0].mxu1 %vm40_vm1, %v1257_v60 }
  0xc0   :  { %1089 = vmatpush3.bf16.msra.mxu1 %v1088_v63  ;;  %1164 = vmatpush3.bf16.msra.mxu0 %v1315_v28 }
  0xc1   :  { %1090 = vmatprep.subr.bf16.mxu1 %v1254_v1  ;;  %1165 = vmatprep.subr.bf16.mxu0 %v1254_v1 }
  0xc2   :  { %931 = vmatprep.mubr.msk.f32.mxu1 %vm1255_vm0, %v1256_v53 }
  0xc4   :  { %1092 = vmatpush3.bf16.msra.mxu1 %v1091_v0  ;;  %1167 = vmatpush3.bf16.msra.mxu0 %v1336_v42 }
  0xc5   :  { %1093 = vmatprep.subr.bf16.mxu1 %v1254_v1  ;;  %1168 = vmatprep.subr.bf16.mxu0 %v1254_v1 }
  0xc8   :  { %1095 = vmatpush3.bf16.msra.mxu1 %v1094_v3  ;;  %1170 = vmatpush3.bf16.msra.mxu0 %v1378_v56 }
  0xc9   :  { %1096 = vmatprep.subr.bf16.mxu1 %v1254_v1  ;;  %1171 = vmatprep.subr.bf16.mxu0 %v1254_v1 }
  0xcc   :  { %1098 = vmatpush3.bf16.msra.mxu1 %v1097_v4  ;;  %1173 = vmatpush3.bf16.msra.mxu0 %v1412_v12 }
  0xcd   :  { %1099 = vmatprep.subr.bf16.mxu1 %v1254_v1  ;;  %1174 = vmatprep.subr.bf16.mxu0 %v1254_v1 }
  0xd0   :  { %1101 = vmatpush3.bf16.msra.mxu1 %v1100_v22  ;;  %1176 = vmatpush3.bf16.msra.mxu0 %v1435_v59 }
  0xd1   :  { %1102 = vmatprep.subr.bf16.mxu1 %v1254_v1  ;;  %1177 = vmatprep.subr.bf16.mxu0 %v1254_v1 }
  0xd4   :  { %1104 = vmatpush3.bf16.msra.mxu1 %v1103_v26  ;;  %1179 = vmatpush3.bf16.msra.mxu0 %v1453_v34 }
  0xd5   :  { %1105 = vmatprep.subr.bf16.mxu1 %v1254_v1  ;;  %1180 = vmatprep.subr.bf16.mxu0 %v1254_v1 }
  0xd8   :  { %1107 = vmatpush3.bf16.msra.mxu1 %v1106_v7  ;;  %1182 = vmatpush3.bf16.msra.mxu0 %v1471_v35 }
  0xd9   :  { %1108 = vmatprep.subr.bf16.mxu1 %v1254_v1 }
  0xdb   :  { %1037 = vmatmul.mubr.msk.f32.vlgmr.msra.gmra.mrb[0].mxu0 %vm40_vm1, %v1257_v60 }
  0xdc   :  { %1110 = vmatpush3.bf16.msra.mxu1 %v1109_v17 }
  0xdf   :  { %932 = vmatmul.mubr.f32.vlgmr.msra.gmra.mrb[0].mxu1 %v1511_v27 }
 0x1ae   :  { %v697_v16 = vpop.f32.mrb[0].mxu0 }
 0x1af   :  { %v1038_v23 = vpop.f32.mrb[1].mxu0 }
 0x1b2   :  { %v402_v24 = vpop.f32.mrb[0].mxu1 }
 0x1b3   :  { %v1183_v25 = vadd.f32 %v697_v16, %v402_v24  ;;  %v933_v28 = vpop.f32.mrb[1].mxu1 }
 0x1b5   :  { %707 = vst [vmem:[#allocation6] sm:$0xff] %v1183_v25 }
 0x1b6   :  { %1235 = shalt.err (!%p1232_p12)
}
 0x1b7   :  { %s1236_s28 = scalar_lea.hbm %s1617_s2, 128 }
 0x1b8   :  { %p1237_p13 = scmp.ne.s32.totalorder %s1617_s2, %s1236_s28  ;;  %p1240_p0 = scmp.lt.u32.totalorder %s1236_s28, %s1617_s2 }
 0x1ba   :  { %p1242_p1 = pnand %p1240_p0, %p1237_p13 }
 0x1bc   :  { %1245 = shalt.err (!%p1242_p1)
}
 0x1bd   :  { %717 = dma.vmem_to_hbm [thread:$0]  %s715_s1, 128, %s1617_s2, [#allocation5]  }
 0x1be   :  { %1248 = dma.done.wait [#allocation5], 128  }
 0x1bf   :  { %1249 = vsyncadd [#allocation5], 4294967168 }
 0x1c0   :  { %721 = vsyncpa [#allocation4], 1 }
 0x1c1   :  { %722 = vsyncpa [#allocation5], 1 }

</bundles_post_ra>
